<compile_context>
chip_gen: v5e
topology: v5e:2x2
jax: 0.10.0
libtpu: 0.0.40
codegen_flags: <defaults>
</compile_context>

<pallas_src>
import functools

import jax
import jax.numpy as jnp
from jax import lax
from jax.experimental import pallas as pl
from jax.experimental.pallas import tpu as pltpu


def _graph_adj_kernel(x_ref, w_ref, shift_ref, out_ref, phi_scr, theta_t_scr,
                      *, exp_bf16):
    # x_ref:       (BT, N, C)    bf16   (resident across the q axis)
    # w_ref:       (C, 2*Cp)     bf16   folded (BN-scale * conv) weights, phi|theta
    # shift_ref:   (1, 2*Cp)     f32    folded BN shifts, phi|theta (zero-padded)
    # out_ref:     (BT, TQ, N)   f32
    # phi_scr:     (BT, N, Cp)   bf16   VMEM scratch
    # theta_t_scr: (BT, Cp, N)   bf16   VMEM scratch (theta pre-transposed)
    bt, n, c = x_ref.shape
    tq = out_ref.shape[1]
    cp = phi_scr.shape[-1]
    q = pl.program_id(1)

    # Fused phi|theta projection, computed once per batch tile (q == 0) as a
    # single big-M MXU matmul; persists in VMEM scratch across the q-tile loop.
    @pl.when(q == 0)
    def _():
        x_all = x_ref[...].reshape(bt * n, c)
        proj = jnp.dot(x_all, w_ref[...],
                       preferred_element_type=jnp.float32)        # (BT*N, 2*Cp) f32
        proj = jnp.maximum(proj + shift_ref[...], 0.0)            # shift + ReLU (f32 epilogue)
        phi = proj[:, :cp].astype(phi_scr.dtype).reshape(bt, n, cp)
        theta = proj[:, cp:].astype(theta_t_scr.dtype).reshape(bt, n, cp)
        phi_scr[...] = phi
        theta_t_scr[...] = jnp.transpose(theta, (0, 2, 1))        # one transpose / batch tile

    row0 = pl.multiple_of(q * tq, tq)

    def body(b, carry):
        phi_q = phi_scr[b, pl.ds(row0, tq), :]                    # (TQ, Cp) bf16
        logits = jnp.dot(phi_q, theta_t_scr[b],
                         preferred_element_type=jnp.float32)      # (TQ, N) f32
        # softmax over the full N columns (row tile always sees all keys)
        m = jnp.max(logits, axis=-1, keepdims=True)
        z = logits - m
        if exp_bf16:
            # v6e/v7x: bf16 EUP/VPU path ~doubles exp throughput; max/sum/recip stay f32.
            e = jnp.exp(z.astype(jnp.bfloat16))
            s = jnp.sum(e.astype(jnp.float32), axis=-1, keepdims=True)
            inv = pl.reciprocal(s, approx=True)
            out_ref[b] = (e * inv.astype(jnp.bfloat16)).astype(out_ref.dtype)
        else:
            # v5e: no bf16 VPU/EUP — stay in f32.
            e = jnp.exp(z)
            inv = pl.reciprocal(jnp.sum(e, axis=-1, keepdims=True), approx=True)
            out_ref[b] = (e * inv).astype(out_ref.dtype)
        return carry

    lax.fori_loop(0, bt, body, 0, unroll=True)


def _round_up(x, m):
    return ((x + m - 1) // m) * m


def _largest_divisor_leq(n, cap):
    cap = max(1, min(n, cap))
    for t in range(cap, 0, -1):
        if n % t == 0:
            return t
    return 1


def _choose_row_tile(n, cap):
    # Row tile over N; the (BT, TQ, N) f32 output/logits tile is the big VMEM
    # consumer for large N. NOTE: falls back to TQ=N if no multiple-of-8
    # divisor <= cap exists (e.g. prime N > cap); such shapes may be tight on v7x.
    if n <= cap:
        return n
    for t in range(cap, 7, -1):
        if n % t == 0 and t % 8 == 0:
            return t
    return n


def _tpu_generation_params():
    kind = ""
    try:
        kind = jax.devices()[0].device_kind.lower()
    except Exception:
        pass
    is_v5 = "v5" in kind
    is_v7 = "v7" in kind
    if is_v7:
        # 64 MiB VMEM per TensorCore: conservative tiles, headroom for Mosaic scratch,
        # and >= 2 batch grid steps so both TensorCores get work.
        return dict(vmem_cap=48 << 20, budget=8 << 20, tq_cap=256,
                    exp_bf16=True, two_batch_steps=True)
    if is_v5:
        # 128 MiB VMEM, but no bf16 VPU/EUP.
        return dict(vmem_cap=100 << 20, budget=24 << 20, tq_cap=512,
                    exp_bf16=False, two_batch_steps=False)
    # v6e (or unknown): 128 MiB VMEM, bf16 VPU/EUP available.
    return dict(vmem_cap=96 << 20, budget=24 << 20, tq_cap=512,
                exp_bf16=True, two_batch_steps=False)


def _choose_tiles(B, N, C, Cp, budget_bytes, tq_cap, two_batch_steps):
    TQ = _choose_row_tile(N, tq_cap)
    per_b = (N * C * 2            # x (bf16), resident across the q loop
             + 2 * N * Cp * 2     # phi / theta^T scratch (bf16)
             + 2 * TQ * N * 4)    # logits + output tile (f32)
    bt_cap = max(1, budget_bytes // max(per_b, 1))
    bt_cap = min(bt_cap, 8)       # keep the unrolled per-b loop small
    if two_batch_steps and B > 1:
        bt_cap = min(bt_cap, max(1, B // 2))   # >= 2 batch grid steps (megacore)
    return _largest_divisor_leq(B, bt_cap), TQ


def graph_adj_embedded_gaussian(x, w_phi, w_theta,
                                phi_scale, phi_shift, theta_scale, theta_shift):
    """x: (B, N, C) float32. w_*: (C, C') pre-transposed 1x1-conv weights.
    *_scale / *_shift: (1, C') folded eval-mode BatchNorm affine params.
    Returns adj: (B, N, N) float32, softmax over the last dim.
    NOTE: uses pl.reciprocal(approx=True), so rows sum to 1 only to ~1e-3."""
    B, N, C = x.shape
    Ci = w_phi.shape[1]
    Cp = max(128, _round_up(Ci, 128))    # lane-align the phi/theta split & logits K

    # Fold the BN scale into the conv weights, zero-pad Ci -> Cp (padded
    # columns are exactly zero after shift(=0)+ReLU, so logits are unchanged),
    # and fuse phi|theta into a single (C, 2*Cp) matmul.
    pad = Cp - Ci
    w_phi_f = jnp.pad(w_phi * phi_scale, ((0, 0), (0, pad)))
    w_theta_f = jnp.pad(w_theta * theta_scale, ((0, 0), (0, pad)))
    w_cat = jnp.concatenate([w_phi_f, w_theta_f], axis=1).astype(jnp.bfloat16)   # (C, 2*Cp)
    shift_cat = jnp.concatenate(
        [jnp.pad(phi_shift, ((0, 0), (0, pad))),
         jnp.pad(theta_shift, ((0, 0), (0, pad)))], axis=1).astype(jnp.float32)  # (1, 2*Cp)
    x_bf16 = x.astype(jnp.bfloat16)

    gen = _tpu_generation_params()
    BT, TQ = _choose_tiles(B, N, C, Cp, gen["budget"], gen["tq_cap"],
                           gen["two_batch_steps"])

    grid_spec = pltpu.PrefetchScalarGridSpec(
        num_scalar_prefetch=0,
        grid=(B // BT, N // TQ),
        in_specs=[
            pl.BlockSpec((BT, N, C), lambda b, q: (b, 0, 0)),     # x (resident across q)
            pl.BlockSpec((C, 2 * Cp), lambda b, q: (0, 0)),       # fused folded weights
            pl.BlockSpec((1, 2 * Cp), lambda b, q: (0, 0)),       # fused BN shifts
        ],
        out_specs=pl.BlockSpec((BT, TQ, N), lambda b, q: (b, q, 0)),
        scratch_shapes=[
            pltpu.VMEM((BT, N, Cp), jnp.bfloat16),                # phi
            pltpu.VMEM((BT, Cp, N), jnp.bfloat16),                # theta^T
        ],
    )

    vmem_est = (2 * BT * N * C * 2                   # x tile (bf16), double-buffered
                + 2 * BT * TQ * N * 4                # out tile (f32), double-buffered
                + 2 * BT * N * Cp * 2                # phi + theta^T scratch (bf16)
                + BT * N * 2 * Cp * 4                # projection f32 temp (q==0)
                + 2 * (C * 2 * Cp * 2 + 2 * Cp * 4)  # weights + shifts
                + 2 * BT * TQ * N * 4                # in-flight logits / exp temps
                + (4 << 20))                         # headroom
    compiler_params = pltpu.CompilerParams(
        # q must stay 'arbitrary' (sequential) for the pl.when(q==0) scratch-resident
        # projection; b is the parallel (megacore) axis.
        dimension_semantics=("parallel", "arbitrary"),
        vmem_limit_bytes=int(min(max(vmem_est, 32 << 20), gen["vmem_cap"])),
    )

    cost = pl.CostEstimate(
        flops=int(2 * B * N * C * 2 * Cp + 2 * B * N * N * Cp),
        transcendentals=int(B * N * N),
        bytes_accessed=int(B * N * C * 2 + 2 * C * 2 * Cp * 2 + B * N * N * 4),
    )

    kernel = functools.partial(_graph_adj_kernel, exp_bf16=gen["exp_bf16"])

    # TODO(synk): for tiny N (< 128) the last-dim-N output produces masked
    # partial stores; a lane-dense (B, N*N) output layout would be faster but
    # is skipped to keep the (B, N, N) contract and in-kernel layout simple.
    return pl.pallas_call(
        kernel,
        out_shape=jax.ShapeDtypeStruct((B, N, N), jnp.float32),
        grid_spec=grid_spec,
        compiler_params=compiler_params,
        cost_estimate=cost,
    )(x_bf16, w_cat, shift_cat)


def _fold_bn(gamma, beta, running_mean, running_var, eps=1e-5):
    scale = gamma / jnp.sqrt(running_var + eps)
    shift = beta - running_mean * scale
    return scale[None, :], shift[None, :]


def _reference(x, w_phi, w_theta, phi_scale, phi_shift, theta_scale, theta_shift):
    phi = jnp.maximum(jnp.einsum('bnc,ck->bnk', x, w_phi) * phi_scale + phi_shift, 0.0)
    theta = jnp.maximum(jnp.einsum('bnc,ck->bnk', x, w_theta) * theta_scale + theta_shift, 0.0)
    logits = jnp.einsum('bnk,bmk->bnm', phi, theta)
    return jax.nn.softmax(logits, axis=-1)


if __name__ == "__main__":
    # Small shapes: B=2, N=8 tokens, C=32 channels, channel_stride=2 -> C'=16
    B, N, C = 2, 8, 32
    channel_stride = 2
    Ci = C // channel_stride

    key = jax.random.PRNGKey(0)
    kx, kwp, kwt, kg1, kb1, km1, kv1, kg2, kb2, km2, kv2 = jax.random.split(key, 11)

    x = jax.random.normal(kx, (B, N, C), dtype=jnp.float32)

    # Conv2d(C, Ci, kernel_size=1, bias=False) weights: (Ci, C, 1, 1) -> store as (C, Ci)
    w_phi = (jax.random.normal(kwp, (Ci, C), dtype=jnp.float32) * 0.1).T
    w_theta = (jax.random.normal(kwt, (Ci, C), dtype=jnp.float32) * 0.1).T

    # Eval-mode BatchNorm2d(Ci) parameters, deterministically initialized
    phi_scale, phi_shift = _fold_bn(
        1.0 + 0.1 * jax.random.normal(kg1, (Ci,), dtype=jnp.float32),
        0.1 * jax.random.normal(kb1, (Ci,), dtype=jnp.float32),
        0.1 * jax.random.normal(km1, (Ci,), dtype=jnp.float32),
        jnp.abs(jax.random.normal(kv1, (Ci,), dtype=jnp.float32)) + 0.5,
    )
    theta_scale, theta_shift = _fold_bn(
        1.0 + 0.1 * jax.random.normal(kg2, (Ci,), dtype=jnp.float32),
        0.1 * jax.random.normal(kb2, (Ci,), dtype=jnp.float32),
        0.1 * jax.random.normal(km2, (Ci,), dtype=jnp.float32),
        jnp.abs(jax.random.normal(kv2, (Ci,), dtype=jnp.float32)) + 0.5,
    )

    adj = graph_adj_embedded_gaussian(
        x, w_phi, w_theta, phi_scale, phi_shift, theta_scale, theta_shift)
    adj = jax.block_until_ready(adj)

    ref = _reference(x, w_phi, w_theta, phi_scale, phi_shift, theta_scale, theta_shift)
    assert adj.shape == (B, N, N)
    # bf16 MXU inputs + bf16 exp (v6e/v7x) + approx reciprocal -> relaxed tolerance
    # against the f32 reference (softmax outputs are in [0, 1]).
    assert jnp.allclose(adj, ref, atol=3e-2, rtol=3e-2), "mismatch vs reference"

    print("KERNEL_OK")
</pallas_src>

<mosaic_0001>
module attributes {stable_mosaic.version = 11 : i64} {
  func.func @_graph_adj_kernel(%arg0: i32, %arg1: i32, %arg2: memref<2x8x32xbf16, #tpu.memory_space<vmem>>, %arg3: memref<32x256xbf16, #tpu.memory_space<vmem>>, %arg4: memref<1x256xf32, #tpu.memory_space<vmem>>, %arg5: memref<2x8x8xf32, #tpu.memory_space<vmem>>, %arg6: memref<2x8x128xbf16, #tpu.memory_space<vmem>>, %arg7: memref<2x128x8xbf16, #tpu.memory_space<vmem>>) attributes {dimension_semantics = [#tpu.dimension_semantics<parallel>, #tpu.dimension_semantics<arbitrary>], iteration_bounds = array<i64: 1, 1>, scalar_prefetch = 0 : i64, scratch_operands = 2 : i64, tpu.core_type = #tpu.core_type<tc>, window_params = [{transform_indices = @transform_0, window_bounds = array<i64: 2, 8, 32>}, {pipeline_mode = #tpu.pipeline_mode<synchronous>, transform_indices = @transform_1, window_bounds = array<i64: 32, 256>}, {pipeline_mode = #tpu.pipeline_mode<synchronous>, transform_indices = @transform_2, window_bounds = array<i64: 1, 256>}, {transform_indices = @transform_3, window_bounds = array<i64: 2, 8, 8>}]} {
    %c0_i32 = arith.constant 0 : i32
    %0 = arith.cmpi eq, %arg1, %c0_i32 : i32
    %1 = arith.extui %0 : i1 to i32
    %c0_i32_0 = arith.constant 0 : i32
    %2 = arith.cmpi ne, %1, %c0_i32_0 : i32
    scf.if %2 {
      %c0_16 = arith.constant 0 : index
      %c0_17 = arith.constant 0 : index
      %c0_18 = arith.constant 0 : index
      %57 = vector.load %arg2[%c0_16, %c0_17, %c0_18] : memref<2x8x32xbf16, #tpu.memory_space<vmem>>, vector<2x8x32xbf16>
      %58 = vector.shape_cast %57 : vector<2x8x32xbf16> to vector<16x32xbf16>
      %c0_19 = arith.constant 0 : index
      %c0_20 = arith.constant 0 : index
      %59 = vector.load %arg3[%c0_19, %c0_20] : memref<32x256xbf16, #tpu.memory_space<vmem>>, vector<32x256xbf16>
      %cst_21 = arith.constant dense<0.000000e+00> : vector<16x256xf32>
      %60 = tpu.matmul %58, %59, %cst_21 {dimension_numbers = #tpu.dot_dimension_numbers<[1], [0], [0], [1], [0, 0, 1, 1], [], []>} : vector<16x32xbf16>, vector<32x256xbf16>, vector<16x256xf32> -> vector<16x256xf32>
      %c0_22 = arith.constant 0 : index
      %c0_23 = arith.constant 0 : index
      %61 = vector.load %arg4[%c0_22, %c0_23] : memref<1x256xf32, #tpu.memory_space<vmem>>, vector<1x256xf32>
      %62 = vector.broadcast %61 : vector<1x256xf32> to vector<16x256xf32>
      %63 = arith.addf %60, %62 : vector<16x256xf32>
      %cst_24 = arith.constant 0.000000e+00 : f32
      %64 = vector.broadcast %cst_24 : f32 to vector<16x256xf32>
      %65 = arith.maximumf %63, %64 : vector<16x256xf32>
      %66 = vector.extract_strided_slice %65 {offsets = [0, 0], sizes = [16, 128], strides = [1, 1]} : vector<16x256xf32> to vector<16x128xf32>
      %67 = arith.truncf %66 : vector<16x128xf32> to vector<16x128xbf16>
      %68 = vector.shape_cast %67 : vector<16x128xbf16> to vector<2x8x128xbf16>
      %69 = vector.extract_strided_slice %65 {offsets = [0, 128], sizes = [16, 128], strides = [1, 1]} : vector<16x256xf32> to vector<16x128xf32>
      %70 = arith.truncf %69 : vector<16x128xf32> to vector<16x128xbf16>
      %71 = vector.shape_cast %70 : vector<16x128xbf16> to vector<2x8x128xbf16>
      %c0_25 = arith.constant 0 : index
      %c0_26 = arith.constant 0 : index
      %c0_27 = arith.constant 0 : index
      %72 = vector.load %arg6[%c0_25, %c0_26, %c0_27] : memref<2x8x128xbf16, #tpu.memory_space<vmem>>, vector<2x8x128xbf16>
      tpu.vector_store %arg6[%c0_25, %c0_26, %c0_27], %68 {strides = array<i32>} : memref<2x8x128xbf16, #tpu.memory_space<vmem>>, vector<2x8x128xbf16>,
      %73 = tpu.transpose %71, [0, 2, 1] : vector<2x8x128xbf16> -> vector<2x128x8xbf16>
      %c0_28 = arith.constant 0 : index
      %c0_29 = arith.constant 0 : index
      %c0_30 = arith.constant 0 : index
      %74 = vector.load %arg7[%c0_28, %c0_29, %c0_30] : memref<2x128x8xbf16, #tpu.memory_space<vmem>>, vector<2x128x8xbf16>
      tpu.vector_store %arg7[%c0_28, %c0_29, %c0_30], %73 {strides = array<i32>} : memref<2x128x8xbf16, #tpu.memory_space<vmem>>, vector<2x128x8xbf16>,
    } else {
    }
    %c8_i32 = arith.constant 8 : i32
    %3 = arith.muli %arg1, %c8_i32 : i32
    %4 = tpu.assume_multiple %3, 8 : i32
    %c0_i32_1 = arith.constant 0 : i32
    %5 = arith.index_cast %c0_i32_1 : i32 to index
    %6 = arith.index_cast %4 : i32 to index
    %c0 = arith.constant 0 : index
    %7 = vector.load %arg6[%5, %6, %c0] : memref<2x8x128xbf16, #tpu.memory_space<vmem>>, vector<1x8x128xbf16>
    %8 = vector.shape_cast %7 : vector<1x8x128xbf16> to vector<8x128xbf16>
    %9 = arith.index_cast %c0_i32_1 : i32 to index
    %c0_2 = arith.constant 0 : index
    %c0_3 = arith.constant 0 : index
    %10 = vector.load %arg7[%9, %c0_2, %c0_3] : memref<2x128x8xbf16, #tpu.memory_space<vmem>>, vector<1x128x8xbf16>
    %11 = vector.shape_cast %10 : vector<1x128x8xbf16> to vector<128x8xbf16>
    %cst = arith.constant dense<0.000000e+00> : vector<8x8xf32>
    %12 = tpu.matmul %8, %11, %cst {dimension_numbers = #tpu.dot_dimension_numbers<[1], [0], [0], [1], [0, 0, 1, 1], [], []>} : vector<8x128xbf16>, vector<128x8xbf16>, vector<8x8xf32> -> vector<8x8xf32>
    %cst_4 = arith.constant dense<0xFF800000> : vector<8xf32>
    %13 = vector.multi_reduction <maximumf>, %12, %cst_4 [1] : vector<8x8xf32> to vector<8xf32>
    %14 = vector.shape_cast %13 : vector<8xf32> to vector<8x1xf32>
    %15 = vector.broadcast %14 : vector<8x1xf32> to vector<8x8xf32>
    %16 = arith.subf %12, %15 : vector<8x8xf32>
    %17 = arith.truncf %16 : vector<8x8xf32> to vector<8x8xbf16>
    %18 = math.exp %17 : vector<8x8xbf16>
    %19 = arith.extf %18 : vector<8x8xbf16> to vector<8x8xf32>
    %cst_5 = arith.constant dense<0.000000e+00> : vector<8xf32>
    %20 = vector.multi_reduction <add>, %19, %cst_5 [1] : vector<8x8xf32> to vector<8xf32>
    %21 = vector.shape_cast %20 : vector<8xf32> to vector<8x1xf32>
    %22 = tpu.reciprocal %21 {approx = true} : vector<8x1xf32> -> vector<8x1xf32>
    %23 = arith.truncf %22 : vector<8x1xf32> to vector<8x1xbf16>
    %24 = vector.broadcast %23 : vector<8x1xbf16> to vector<8x8xbf16>
    %25 = arith.mulf %18, %24 : vector<8x8xbf16>
    %26 = arith.extf %25 : vector<8x8xbf16> to vector<8x8xf32>
    %27 = arith.index_cast %c0_i32_1 : i32 to index
    %c0_6 = arith.constant 0 : index
    %c0_7 = arith.constant 0 : index
    %28 = vector.load %arg5[%27, %c0_6, %c0_7] : memref<2x8x8xf32, #tpu.memory_space<vmem>>, vector<1x8x8xf32>
    %29 = vector.shape_cast %28 : vector<1x8x8xf32> to vector<8x8xf32>
    %30 = vector.shape_cast %26 : vector<8x8xf32> to vector<1x8x8xf32>
    tpu.vector_store %arg5[%27, %c0_6, %c0_7], %30 {strides = array<i32>} : memref<2x8x8xf32, #tpu.memory_space<vmem>>, vector<1x8x8xf32>,
    %c1_i32 = arith.constant 1 : i32
    %31 = arith.index_cast %c1_i32 : i32 to index
    %32 = arith.index_cast %4 : i32 to index
    %c0_8 = arith.constant 0 : index
    %33 = vector.load %arg6[%31, %32, %c0_8] : memref<2x8x128xbf16, #tpu.memory_space<vmem>>, vector<1x8x128xbf16>
    %34 = vector.shape_cast %33 : vector<1x8x128xbf16> to vector<8x128xbf16>
    %35 = arith.index_cast %c1_i32 : i32 to index
    %c0_9 = arith.constant 0 : index
    %c0_10 = arith.constant 0 : index
    %36 = vector.load %arg7[%35, %c0_9, %c0_10] : memref<2x128x8xbf16, #tpu.memory_space<vmem>>, vector<1x128x8xbf16>
    %37 = vector.shape_cast %36 : vector<1x128x8xbf16> to vector<128x8xbf16>
    %cst_11 = arith.constant dense<0.000000e+00> : vector<8x8xf32>
    %38 = tpu.matmul %34, %37, %cst_11 {dimension_numbers = #tpu.dot_dimension_numbers<[1], [0], [0], [1], [0, 0, 1, 1], [], []>} : vector<8x128xbf16>, vector<128x8xbf16>, vector<8x8xf32> -> vector<8x8xf32>
    %cst_12 = arith.constant dense<0xFF800000> : vector<8xf32>
    %39 = vector.multi_reduction <maximumf>, %38, %cst_12 [1] : vector<8x8xf32> to vector<8xf32>
    %40 = vector.shape_cast %39 : vector<8xf32> to vector<8x1xf32>
    %41 = vector.broadcast %40 : vector<8x1xf32> to vector<8x8xf32>
    %42 = arith.subf %38, %41 : vector<8x8xf32>
    %43 = arith.truncf %42 : vector<8x8xf32> to vector<8x8xbf16>
    %44 = math.exp %43 : vector<8x8xbf16>
    %45 = arith.extf %44 : vector<8x8xbf16> to vector<8x8xf32>
    %cst_13 = arith.constant dense<0.000000e+00> : vector<8xf32>
    %46 = vector.multi_reduction <add>, %45, %cst_13 [1] : vector<8x8xf32> to vector<8xf32>
    %47 = vector.shape_cast %46 : vector<8xf32> to vector<8x1xf32>
    %48 = tpu.reciprocal %47 {approx = true} : vector<8x1xf32> -> vector<8x1xf32>
    %49 = arith.truncf %48 : vector<8x1xf32> to vector<8x1xbf16>
    %50 = vector.broadcast %49 : vector<8x1xbf16> to vector<8x8xbf16>
    %51 = arith.mulf %44, %50 : vector<8x8xbf16>
    %52 = arith.extf %51 : vector<8x8xbf16> to vector<8x8xf32>
    %53 = arith.index_cast %c1_i32 : i32 to index
    %c0_14 = arith.constant 0 : index
    %c0_15 = arith.constant 0 : index
    %54 = vector.load %arg5[%53, %c0_14, %c0_15] : memref<2x8x8xf32, #tpu.memory_space<vmem>>, vector<1x8x8xf32>
    %55 = vector.shape_cast %54 : vector<1x8x8xf32> to vector<8x8xf32>
    %56 = vector.shape_cast %52 : vector<8x8xf32> to vector<1x8x8xf32>
    tpu.vector_store %arg5[%53, %c0_14, %c0_15], %56 {strides = array<i32>} : memref<2x8x8xf32, #tpu.memory_space<vmem>>, vector<1x8x8xf32>,
    %c2_i32 = arith.constant 2 : i32
    return
  }
  func.func @transform_0(%arg0: i32, %arg1: i32) -> (i32, i32, i32) {
    %c0_i32 = arith.constant 0 : i32
    %c0_i32_0 = arith.constant 0 : i32
    %c0_i32_1 = arith.constant 0 : i32
    return %arg0, %c0_i32, %c0_i32_0 : i32, i32, i32
  }
  func.func @transform_1(%arg0: i32, %arg1: i32) -> (i32, i32) {
    %c0_i32 = arith.constant 0 : i32
    %c0_i32_0 = arith.constant 0 : i32
    %c0_i32_1 = arith.constant 0 : i32
    return %c0_i32, %c0_i32_0 : i32, i32
  }
  func.func @transform_2(%arg0: i32, %arg1: i32) -> (i32, i32) {
    %c0_i32 = arith.constant 0 : i32
    %c0_i32_0 = arith.constant 0 : i32
    %c0_i32_1 = arith.constant 0 : i32
    return %c0_i32, %c0_i32_0 : i32, i32
  }
  func.func @transform_3(%arg0: i32, %arg1: i32) -> (i32, i32, i32) {
    %c0_i32 = arith.constant 0 : i32
    %c0_i32_0 = arith.constant 0 : i32
    return %arg0, %arg1, %c0_i32 : i32, i32, i32
  }
}

</mosaic_0001>

<bundles_post_ra>
// kernel: tpu_custom_call.1
= control target key start
LH: loop header
LB: loop body
LE: loop exit
PB: predicated region body
PF: predicated region fallthrough
CT: control target
= control target key end

     0   :  { %8 = vsyncpa [#allocation5], 0  ;;  %s891_s0 = inlined_call_operand.hbm [shape: bf16[2,8,32], index: 0, kind: input, shape index: {}]   ;;  %s892_s1 = inlined_call_operand.hbm [shape: bf16[32,256], index: 1, kind: input, shape index: {}]   ;;  %s893_s2 = inlined_call_operand.hbm [shape: f32[1,256], index: 2, kind: input, shape index: {}]   ;;  %s894_s3 = inlined_call_operand.hbm [shape: f32[2,8,8], index: 3, kind: output, shape index: {}]  }
   0x1   :  { %9 = vsyncpa [#allocation8], 0  ;;  %s28_s14 = sshll.u32 %s892_s1, 4  ;;  %s29_s14 = int_to_ptr.hbm [resolvable:$true] %s28_s14 }
   0x2   :  { %10 = vsyncpa [#allocation6], 0  ;;  %s801_s15 = smov [#allocation7]   ;;  %s15_s19 = sshll.u32 %s891_s0, 4  ;;  %s16_s19 = int_to_ptr.hbm [resolvable:$true] %s15_s19 }
   0x3   :  { %s30_s16 = sshll.u32 %s801_s15, 4  ;;  %s802_s20 = smov 128   ;;  %s31_s16 = int_to_ptr.vmem [resolvable:$true] %s30_s16 }
   0x4   :  { %s803_s21 = smov 8   ;;  %s804_s22 = smov [#allocation4]  }
   0x5   :  { %36 = dma.hbm_to_vmem [thread:$0]  %s29_s14, 512, %s31_s16, [#allocation8], %s802_s20, %s802_s20, %s803_s21  }
   0x6   :  { %s17_s23 = sshll.u32 %s804_s22, 4  ;;  %s805_s1 = smov 64   ;;  %s18_s23 = int_to_ptr.vmem [resolvable:$true] %s17_s23 }
   0x7   :  { %s806_s24 = smov 4   ;;  %s42_s27 = sshll.u32 %s893_s2, 4  ;;  %s43_s27 = int_to_ptr.hbm [resolvable:$true] %s42_s27 }
   0x8   :  { %23 = dma.hbm_to_vmem [thread:$0]  %s16_s19, 128, %s18_s23, [#allocation5], %s805_s1, %s805_s1, %s806_s24  }
   0x9   :  { %s807_s28 = smov [#allocation9]  }
   0xa   :  { %s44_s0 = sshll.u32 %s807_s28, 4  ;;  %s45_s0 = int_to_ptr.vmem [resolvable:$true] %s44_s0 }
   0xb   :  { %47 = dma.hbm_to_vmem [thread:$0]  %s43_s27, 32, %s45_s0, [#allocation8]  }
   0xc   :  { %795 = dma.done.wait [#allocation5], 128  }
   0xd   :  { %796 = vsyncadd [#allocation5], 4294967168 }
   0xe   :  { %797 = dma.done.wait [#allocation8], 544  }
   0xf   :  { %798 = vsyncadd [#allocation8], 4294966752  ;;  %v642_v0 = vld [vmem:[#allocation7 + $0x14] sm:$0xf]  ;;  %v569_v1 = vld [vmem:[#allocation7 + $0x18] sm:$0xf0] }
  0x10   :  { %v640_v2 = vld [vmem:[#allocation7 + $0x4] sm:$0xf]  ;;  %v572_v3 = vor.u32 %v642_v0, %v569_v1  ;;  %v561_v4 = vld [vmem:[#allocation7 + $0x8] sm:$0xf0]  ;;  %v639_v6 = vld [vmem:[#allocation4] sm:$0xff]  ;;  %vm102_vm0 = vcmask 261120  }
  0x11   :  { %v564_v5 = vor.u32 %v640_v2, %v561_v4  ;;  %v842_v7 = vld [vmem:[#allocation9] sm:$0x3]  ;;  %v567_v17 = vld [vmem:[#allocation7 + $0x10] sm:$0xf]  ;;  %v643_v18 = vld [vmem:[#allocation7 + $0x14] sm:$0xf0] }
  0x12   :  { %126 = vmatpush.bf16.msra.mxu1 %v572_v3  ;;  %v74_v9 = vperm.slane %v842_v7, 1  ;;  %v568_v19 = vor.u32 %v643_v18, %v567_v17  ;;  %v559_v20 = vld [vmem:[#allocation7] sm:$0xf]  ;;  %v641_v21 = vld [vmem:[#allocation7 + $0x4] sm:$0xf0]  ;;  %vm288_vm1 = vcmask 60416  }
  0x13   :  { %v560_v22 = vor.u32 %v641_v21, %v559_v20  ;;  %vm404_vm2 = vcmask 64512   ;;  %s808_s2 = smov [#allocation10]   ;;  %s534_s5 = sshll.u32 %s894_s3, 4  ;;  %s535_s5 = int_to_ptr.hbm [resolvable:$true] %s534_s5 }
  0x14   :  { %112 = vmatpush.bf16.msra.mxu0 %v568_v19  ;;  %s532_s29 = sshll.u32 %s808_s2, 4  ;;  %s533_s29 = int_to_ptr.vmem [resolvable:$true] %s532_s29 }
  0x16   :  { %127 = vmatpush.bf16.msra.mxu1 %v564_v5 }
  0x18   :  { %113 = vmatpush.bf16.msra.mxu0 %v560_v22 }
  0x19   :  { %574 = vmatmul.msk.bf16.vlgmr.msra.gmra.mxu1 %vm102_vm0, %v639_v6 }
  0x1b   :  { %573 = vmatmul.msk.bf16.vlgmr.msra.gmra.mxu0 %vm102_vm0, %v639_v6 }
  0x96   :  { %v129_v8 = vpop.f32.mrf.mxu1 }
  0x97   :  { %v130_v10 = vadd.f32 %v129_v8, %v74_v9 }
  0x99   :  { %v135_v12 = vmax.f32 %v130_v10, 0.0 }
  0x9b   :  { %v140_v15 = vpack.c.bf16 %v135_v12, %v135_v12 }
  0x9e   :  { %v131_v11 = vpop.f32.mrf.mxu1 }
  0x9f   :  { %v132_v13 = vadd.f32 %v131_v11, %v74_v9 }
  0xa1   :  { %v137_v14 = vmax.f32 %v132_v13, 0.0 }
  0xa3   :  { %v141_v16 = vpack.c.bf16 %v137_v14, %v137_v14 }
  0xa5   :  { %674 = vxpose.binary.xlu0.c.b16.start.end [1/2] (short) %v141_v16, %v140_v15, 128 }
 0x151   :  { %v675_v23 = vpop.trf.xlu0 }
 0x152   :  { %v192_v24 = vunpack.c.l.b16 %v675_v23  ;;  %v193_v25 = vunpack.c.h.b16 %v675_v23 }
 0x154   :  { %v224_v26 = vpack.c.b16 %v192_v24, %v192_v24  ;;  %v225_v27 = vpack.c.b16 %v193_v25, %v193_v25  ;;  %v115_v25 = vpop.f32.mrf.mxu0 }
 0x156   :  { %289 = vst.msk [vmem:[#allocation3] sm:$0xf] %vm288_vm1, %v224_v26 }
 0x157   :  { %290 = vst.msk [vmem:[#allocation3 + $0x4] sm:$0xf] %vm288_vm1, %v225_v27  ;;  %v73_v27 = vperm.slane %v842_v7, 0 }
 0x159   :  { %v676_v28 = vpop.trf.xlu0 }
 0x15a   :  { %v208_v29 = vunpack.c.l.b16 %v676_v28  ;;  %v209_v30 = vunpack.c.h.b16 %v676_v28 }
 0x15c   :  { %v240_v31 = vpack.c.b16 %v208_v29, %v208_v29  ;;  %v241_v32 = vpack.c.b16 %v209_v30, %v209_v30 }
 0x15e   :  { %305 = vst.msk [vmem:[#allocation3 + $0x40] sm:$0xf] %vm288_vm1, %v240_v31 }
 0x15f   :  { %306 = vst.msk [vmem:[#allocation3 + $0x44] sm:$0xf] %vm288_vm1, %v241_v32  ;;  %v116_v32 = vadd.f32 %v115_v25, %v73_v27 }
 0x161   :  { %v677_v33 = vpop.trf.xlu0 }
 0x162   :  { %v194_v34 = vunpack.c.l.b16 %v677_v33  ;;  %v195_v35 = vunpack.c.h.b16 %v677_v33  ;;  %v117_v33 = vpop.f32.mrf.mxu0 }
 0x164   :  { %v226_v36 = vpack.c.b16 %v194_v34, %v194_v34  ;;  %v227_v37 = vpack.c.b16 %v195_v35, %v195_v35  ;;  %v134_v35 = vmax.f32 %v116_v32, 0.0 }
 0x166   :  { %291 = vst.msk [vmem:[#allocation3 + $0x8] sm:$0xf] %vm288_vm1, %v226_v36  ;;  %v118_v36 = vadd.f32 %v117_v33, %v73_v27 }
 0x167   :  { %292 = vst.msk [vmem:[#allocation3 + $0xc] sm:$0xf] %vm288_vm1, %v227_v37 }
 0x169   :  { %v678_v38 = vpop.trf.xlu0 }
 0x16a   :  { %v210_v39 = vunpack.c.l.b16 %v678_v38  ;;  %v211_v40 = vunpack.c.h.b16 %v678_v38 }
 0x16c   :  { %v242_v41 = vpack.c.b16 %v210_v39, %v210_v39  ;;  %v243_v42 = vpack.c.b16 %v211_v40, %v211_v40  ;;  %v136_v39 = vmax.f32 %v118_v36, 0.0 }
 0x16e   :  { %307 = vst.msk [vmem:[#allocation3 + $0x48] sm:$0xf] %vm288_vm1, %v242_v41 }
 0x16f   :  { %308 = vst.msk [vmem:[#allocation3 + $0x4c] sm:$0xf] %vm288_vm1, %v243_v42  ;;  %v663_v42 = vpack.c.bf16 %v136_v39, %v134_v35 }
 0x171   :  { %v679_v43 = vpop.trf.xlu0  ;;  %664 = vst [vmem:[#allocation2] sm:$0xff] %v663_v42  }
 0x172   :  { %v196_v44 = vunpack.c.l.b16 %v679_v43  ;;  %v197_v45 = vunpack.c.h.b16 %v679_v43 }
 0x174   :  { %v228_v46 = vpack.c.b16 %v196_v44, %v196_v44  ;;  %v229_v47 = vpack.c.b16 %v197_v45, %v197_v45 }
 0x176   :  { %293 = vst.msk [vmem:[#allocation3 + $0x10] sm:$0xf] %vm288_vm1, %v228_v46 }
 0x177   :  { %294 = vst.msk [vmem:[#allocation3 + $0x14] sm:$0xf] %vm288_vm1, %v229_v47 }
 0x179   :  { %v680_v48 = vpop.trf.xlu0 }
 0x17a   :  { %v212_v49 = vunpack.c.l.b16 %v680_v48  ;;  %v213_v50 = vunpack.c.h.b16 %v680_v48 }
 0x17c   :  { %v244_v51 = vpack.c.b16 %v212_v49, %v212_v49  ;;  %v245_v52 = vpack.c.b16 %v213_v50, %v213_v50 }
 0x17e   :  { %309 = vst.msk [vmem:[#allocation3 + $0x50] sm:$0xf] %vm288_vm1, %v244_v51 }
 0x17f   :  { %310 = vst.msk [vmem:[#allocation3 + $0x54] sm:$0xf] %vm288_vm1, %v245_v52 }
 0x181   :  { %v681_v53 = vpop.trf.xlu0 }
 0x182   :  { %v198_v54 = vunpack.c.l.b16 %v681_v53  ;;  %v199_v55 = vunpack.c.h.b16 %v681_v53 }
 0x184   :  { %v230_v56 = vpack.c.b16 %v198_v54, %v198_v54  ;;  %v231_v57 = vpack.c.b16 %v199_v55, %v199_v55  ;;  %v646_v55 = vld [vmem:[#allocation3 + $0x10] sm:$0xff] }
 0x186   :  { %295 = vst.msk [vmem:[#allocation3 + $0x18] sm:$0xf] %vm288_vm1, %v230_v56 }
 0x187   :  { %296 = vst.msk [vmem:[#allocation3 + $0x1c] sm:$0xf] %vm288_vm1, %v231_v57  ;;  %v645_v57 = vld [vmem:[#allocation3 + $0x8] sm:$0xff] }
 0x189   :  { %v682_v58 = vpop.trf.xlu0 }
 0x18a   :  { %v214_v59 = vunpack.c.l.b16 %v682_v58  ;;  %v215_v60 = vunpack.c.h.b16 %v682_v58 }
 0x18c   :  { %v246_v61 = vpack.c.b16 %v214_v59, %v214_v59  ;;  %v247_v62 = vpack.c.b16 %v215_v60, %v215_v60  ;;  %v644_v59 = vld [vmem:[#allocation3] sm:$0xff]  ;;  %v654_v60 = vld [vmem:[#allocation3 + $0x50] sm:$0xff] }
 0x18e   :  { %311 = vst.msk [vmem:[#allocation3 + $0x58] sm:$0xf] %vm288_vm1, %v246_v61  ;;  %v647_v53 = vld [vmem:[#allocation3 + $0x18] sm:$0xff] }
 0x18f   :  { %312 = vst.msk [vmem:[#allocation3 + $0x5c] sm:$0xf] %vm288_vm1, %v247_v62  ;;  %v326_v61 = vld [vmem:[#allocation2] sm:$0xf]  ;;  %v653_v62 = vld [vmem:[#allocation3 + $0x48] sm:$0xff] }
 0x191   :  { %v683_v63 = vpop.trf.xlu0 }
 0x192   :  { %v200_v0 = vunpack.c.l.b16 %v683_v63  ;;  %v201_v1 = vunpack.c.h.b16 %v683_v63  ;;  %v652_v63 = vld [vmem:[#allocation3 + $0x40] sm:$0xff] }
 0x194   :  { %v232_v2 = vpack.c.b16 %v200_v0, %v200_v0  ;;  %v233_v3 = vpack.c.b16 %v201_v1, %v201_v1  ;;  %v428_v0 = vld [vmem:[#allocation2 + $0x4] sm:$0xf] }
 0x196   :  { %297 = vst.msk [vmem:[#allocation3 + $0x20] sm:$0xf] %vm288_vm1, %v232_v2  ;;  %v655_v58 = vld [vmem:[#allocation3 + $0x58] sm:$0xff] }
 0x197   :  { %298 = vst.msk [vmem:[#allocation3 + $0x24] sm:$0xf] %vm288_vm1, %v233_v3 }
 0x199   :  { %v684_v4 = vpop.trf.xlu0 }
 0x19a   :  { %v216_v5 = vunpack.c.l.b16 %v684_v4  ;;  %v217_v6 = vunpack.c.h.b16 %v684_v4 }
 0x19c   :  { %v248_v8 = vpack.c.b16 %v216_v5, %v216_v5  ;;  %v249_v9 = vpack.c.b16 %v217_v6, %v217_v6 }
 0x19e   :  { %313 = vst.msk [vmem:[#allocation3 + $0x60] sm:$0xf] %vm288_vm1, %v248_v8  ;;  %v648_v51 = vld [vmem:[#allocation3 + $0x20] sm:$0xff] }
 0x19f   :  { %314 = vst.msk [vmem:[#allocation3 + $0x64] sm:$0xf] %vm288_vm1, %v249_v9 }
 0x1a1   :  { %v685_v10 = vpop.trf.xlu0 }
 0x1a2   :  { %v202_v11 = vunpack.c.l.b16 %v685_v10  ;;  %v203_v12 = vunpack.c.h.b16 %v685_v10 }
 0x1a4   :  { %v234_v13 = vpack.c.b16 %v202_v11, %v202_v11  ;;  %v235_v14 = vpack.c.b16 %v203_v12, %v203_v12 }
 0x1a6   :  { %299 = vst.msk [vmem:[#allocation3 + $0x28] sm:$0xf] %vm288_vm1, %v234_v13  ;;  %v656_v56 = vld [vmem:[#allocation3 + $0x60] sm:$0xff] }
 0x1a7   :  { %300 = vst.msk [vmem:[#allocation3 + $0x2c] sm:$0xf] %vm288_vm1, %v235_v14 }
 0x1a9   :  { %v686_v15 = vpop.trf.xlu0 }
 0x1aa   :  { %v218_v16 = vunpack.c.l.b16 %v686_v15  ;;  %v219_v17 = vunpack.c.h.b16 %v686_v15 }
 0x1ac   :  { %v250_v18 = vpack.c.b16 %v218_v16, %v218_v16  ;;  %v251_v19 = vpack.c.b16 %v219_v17, %v219_v17 }
 0x1ae   :  { %315 = vst.msk [vmem:[#allocation3 + $0x68] sm:$0xf] %vm288_vm1, %v250_v18  ;;  %v649_v49 = vld [vmem:[#allocation3 + $0x28] sm:$0xff] }
 0x1af   :  { %316 = vst.msk [vmem:[#allocation3 + $0x6c] sm:$0xf] %vm288_vm1, %v251_v19 }
 0x1b1   :  { %v687_v20 = vpop.trf.xlu0 }
 0x1b2   :  { %v204_v21 = vunpack.c.l.b16 %v687_v20  ;;  %v205_v22 = vunpack.c.h.b16 %v687_v20 }
 0x1b4   :  { %v236_v23 = vpack.c.b16 %v204_v21, %v204_v21  ;;  %v237_v24 = vpack.c.b16 %v205_v22, %v205_v22 }
 0x1b6   :  { %301 = vst.msk [vmem:[#allocation3 + $0x30] sm:$0xf] %vm288_vm1, %v236_v23  ;;  %v657_v54 = vld [vmem:[#allocation3 + $0x68] sm:$0xff] }
 0x1b7   :  { %302 = vst.msk [vmem:[#allocation3 + $0x34] sm:$0xf] %vm288_vm1, %v237_v24 }
 0x1b9   :  { %v688_v26 = vpop.trf.xlu0 }
 0x1ba   :  { %v220_v28 = vunpack.c.l.b16 %v688_v26  ;;  %v221_v29 = vunpack.c.h.b16 %v688_v26 }
 0x1bc   :  { %v252_v30 = vpack.c.b16 %v220_v28, %v220_v28  ;;  %v253_v31 = vpack.c.b16 %v221_v29, %v221_v29 }
 0x1be   :  { %317 = vst.msk [vmem:[#allocation3 + $0x70] sm:$0xf] %vm288_vm1, %v252_v30  ;;  %v650_v48 = vld [vmem:[#allocation3 + $0x30] sm:$0xff] }
 0x1bf   :  { %318 = vst.msk [vmem:[#allocation3 + $0x74] sm:$0xf] %vm288_vm1, %v253_v31 }
 0x1c1   :  { %v689_v34 = vpop.trf.xlu0 }
 0x1c2   :  { %v206_v37 = vunpack.c.l.b16 %v689_v34  ;;  %v207_v38 = vunpack.c.h.b16 %v689_v34 }
 0x1c4   :  { %v238_v40 = vpack.c.b16 %v206_v37, %v206_v37  ;;  %v239_v41 = vpack.c.b16 %v207_v38, %v207_v38 }
 0x1c6   :  { %303 = vst.msk [vmem:[#allocation3 + $0x38] sm:$0xf] %vm288_vm1, %v238_v40  ;;  %v658_v52 = vld [vmem:[#allocation3 + $0x70] sm:$0xff] }
 0x1c7   :  { %304 = vst.msk [vmem:[#allocation3 + $0x3c] sm:$0xf] %vm288_vm1, %v239_v41 }
 0x1c9   :  { %v690_v7 = vpop.trf.xlu0 }
 0x1ca   :  { %v222_v43 = vunpack.c.l.b16 %v690_v7  ;;  %v223_v44 = vunpack.c.h.b16 %v690_v7 }
 0x1cc   :  { %v254_v45 = vpack.c.b16 %v222_v43, %v222_v43  ;;  %v255_v46 = vpack.c.b16 %v223_v44, %v223_v44 }
 0x1ce   :  { %319 = vst.msk [vmem:[#allocation3 + $0x78] sm:$0xf] %vm288_vm1, %v254_v45  ;;  %v651_v47 = vld [vmem:[#allocation3 + $0x38] sm:$0xff] }
 0x1cf   :  { %320 = vst.msk [vmem:[#allocation3 + $0x7c] sm:$0xf] %vm288_vm1, %v255_v46  ;;  %391 = vmatpush.bf16.msra.mxu2 %v651_v47 }
 0x1d3   :  { %392 = vmatpush.bf16.msra.mxu2 %v650_v48 }
 0x1d6   :  { %v659_v50 = vld [vmem:[#allocation3 + $0x78] sm:$0xff] }
 0x1d7   :  { %393 = vmatpush.bf16.msra.mxu2 %v649_v49  ;;  %494 = vmatpush.bf16.msra.mxu3 %v659_v50 }
 0x1db   :  { %394 = vmatpush.bf16.msra.mxu2 %v648_v51  ;;  %495 = vmatpush.bf16.msra.mxu3 %v658_v52 }
 0x1df   :  { %395 = vmatpush.bf16.msra.mxu2 %v647_v53  ;;  %496 = vmatpush.bf16.msra.mxu3 %v657_v54 }
 0x1e3   :  { %396 = vmatpush.bf16.msra.mxu2 %v646_v55  ;;  %497 = vmatpush.bf16.msra.mxu3 %v656_v56 }
 0x1e7   :  { %397 = vmatpush.bf16.msra.mxu2 %v645_v57  ;;  %498 = vmatpush.bf16.msra.mxu3 %v655_v58 }
 0x1eb   :  { %398 = vmatpush.bf16.msra.mxu2 %v644_v59  ;;  %499 = vmatpush.bf16.msra.mxu3 %v654_v60 }
 0x1ee   :  { %399 = vmatmul.bf16.vlgmr.msra.gmra.mxu2 %v326_v61 }
 0x1ef   :  { %500 = vmatpush.bf16.msra.mxu3 %v653_v62 }
 0x1f3   :  { %501 = vmatpush.bf16.msra.mxu3 %v652_v63 }
 0x1f6   :  { %502 = vmatmul.bf16.vlgmr.msra.gmra.mxu3 %v428_v0 }
 0x271   :  { %v400_v1 = vpop.f32.mrf.mxu2 }
 0x272   :  { %v405_v2 = vsel %vm404_vm2, %v400_v1, -inf }
 0x273   :  { %406 = vmax.xlane.f32.xlu0 %v405_v2 }
 0x279   :  { %v402_v3 = vpop.f32.mrf.mxu2  ;;  %v503_v4 = vpop.f32.mrf.mxu3 }
 0x27a   :  { %v507_v5 = vsel %vm404_vm2, %v503_v4, -inf }
 0x27b   :  { %508 = vmax.xlane.f32.xlu1 %v507_v5 }
 0x281   :  { %v505_v6 = vpop.f32.mrf.mxu3 }
 0x2e6   :  { %v407_v8 = vpop.xlane.xlu0 %406 }
 0x2e7   :  { %v408_v9 = vsub.f32 %v400_v1, %v407_v8 }
 0x2e9   :  { %v409_v10 = vpack.c.bf16 %v408_v9, %v408_v9 }
 0x2eb   :  { %v410_v11 = vunpack.c.l.bf16 %v409_v10 }
 0x2ed   :  { %v411_v12 = vmul.f32 1.442695, %v410_v11 }
 0x2ee   :  { %v509_v13 = vpop.xlane.xlu1 %508 }
 0x2ef   :  { %691 = vpow2.f32 %v411_v12  ;;  %v510_v14 = vsub.f32 %v503_v4, %v509_v13 }
 0x2f1   :  { %v511_v15 = vpack.c.bf16 %v510_v14, %v510_v14 }
 0x2f3   :  { %v512_v16 = vunpack.c.l.bf16 %v511_v15 }
 0x2f5   :  { %v692_v17 = vpop.eup %691  ;;  %v513_v18 = vmul.f32 1.442695, %v512_v16 }
 0x2f6   :  { %v413_v19 = vpack.c.bf16 %v692_v17, %v692_v17 }
 0x2f7   :  { %693 = vpow2.f32 %v513_v18 }
 0x2f8   :  { %v414_v20 = vunpack.c.l.bf16 %v413_v19 }
 0x2fa   :  { %v415_v21 = vsel %vm404_vm2, %v414_v20, 0.0 }
 0x2fb   :  { %416 = vadd.xlane.f32.xlu1 %v415_v21 }
 0x2fd   :  { %v694_v22 = vpop.eup %693 }
 0x2fe   :  { %v515_v23 = vpack.c.bf16 %v694_v22, %v694_v22 }
 0x300   :  { %v516_v24 = vunpack.c.l.bf16 %v515_v23 }
 0x302   :  { %v517_v25 = vsel %vm404_vm2, %v516_v24, 0.0 }
 0x303   :  { %518 = vadd.xlane.f32.xlu2 %v517_v25 }
 0x36e   :  { %v417_v26 = vpop.xlane.xlu1 %416 }
 0x36f   :  { %695 = vrcp.f32 %v417_v26 }
 0x375   :  { %v696_v27 = vpop.eup %695 }
 0x376   :  { %v419_v28 = vpack.c.bf16 %v696_v27, %v696_v27  ;;  %v519_v29 = vpop.xlane.xlu2 %518 }
 0x377   :  { %697 = vrcp.f32 %v519_v29 }
 0x378   :  { %v420_v30 = vunpack.c.l.bf16 %v419_v28 }
 0x37a   :  { %v421_v31 = vmul.f32 %v420_v30, %v414_v20 }
 0x37c   :  { %v422_v32 = vpack.c.bf16 %v421_v31, %v421_v31 }
 0x37d   :  { %v698_v33 = vpop.eup %697 }
 0x37e   :  { %v423_v34 = vunpack.c.l.bf16 %v422_v32  ;;  %v521_v35 = vpack.c.bf16 %v698_v33, %v698_v33 }
 0x380   :  { %424 = vst.msk [vmem:[#allocation10] sm:$0xff] %vm404_vm2, %v423_v34  ;;  %v522_v36 = vunpack.c.l.bf16 %v521_v35 }
 0x382   :  { %v523_v37 = vmul.f32 %v522_v36, %v516_v24 }
 0x384   :  { %v524_v38 = vpack.c.bf16 %v523_v37, %v523_v37 }
 0x386   :  { %v525_v39 = vunpack.c.l.bf16 %v524_v38 }
 0x388   :  { %527 = vst.msk [vmem:[#allocation10 + $0x8] sm:$0xff] %vm404_vm2, %v525_v39 }
 0x389   :  { %540 = dma.vmem_to_hbm [thread:$0]  %s533_s29, 256, %s535_s5, [#allocation6], %s802_s20, %s802_s20, %s803_s21  }
 0x38a   :  { %799 = dma.done.wait [#allocation6], 256  }
 0x38b   :  { %800 = vsyncadd [#allocation6], 4294967040 }
 0x38c   :  { %545 = vsyncpa [#allocation5], 1 }
 0x38d   :  { %546 = vsyncpa [#allocation8], 1 }
 0x38e   :  { %547 = vsyncpa [#allocation6], 1 }

</bundles_post_ra>
